<compile_context>
chip_gen: v6e
topology: v6e:2x2x1
jax: 0.10.0
libtpu: 0.0.40
codegen_flags: <defaults>
</compile_context>

<pallas_src>
import jax
import jax.numpy as jnp
from jax.experimental import pallas as pl
from jax.experimental.pallas import tpu as pltpu


def _ffn_kernel(xT_ref, w1_ref, b1_ref, w2_ref, b2_ref, w3_ref, b3_ref, o_ref):
    xT = xT_ref[...]                                                   # (D, tb)
    h1 = jnp.dot(w1_ref[...], xT, preferred_element_type=jnp.float32) + b1_ref[...]
    h1 = jnp.maximum(h1, 0.0)                                          # (U, tb)
    h2 = jnp.dot(w2_ref[...], h1, preferred_element_type=jnp.float32) + b2_ref[...]
    h2 = jnp.maximum(h2, 0.0)                                          # (U2, tb)
    # Linear(U2 -> 1): VPU multiply + sublane (XLU) reduce, lane-dense result.
    y = jnp.sum(h2 * w3_ref[...], axis=0, keepdims=True) + b3_ref[0]   # (1, tb)
    o_ref[...] = y.astype(o_ref.dtype)


def feedforward_forecast(x, params, *, batch_tile=None):
    """x: (B, input_size) float32.  Returns (B,) float32 == module(x)."""
    B, D = x.shape
    w1, b1, w2, b2, w3, b3 = params
    U, U2 = w1.shape[0], w2.shape[0]

    # Batch tile: lane-dense (multiple of 128), ~1 MiB of x per tile so the DMA
    # pipeline is saturated while staying well inside scoped VMEM on v5e/v7x.
    if batch_tile is None:
        cap = max(128, (((1 << 20) // (D * 4)) // 128) * 128)
        tb = min(cap, pl.cdiv(B, 128) * 128)
    else:
        assert batch_tile % 128 == 0, "batch_tile must be a multiple of 128"
        tb = batch_tile
    B_pad = pl.cdiv(B, tb) * tb

    # Batch-in-lanes layout: (D, B_pad). Zero-padded columns are computed & dropped.
    xT = x.T
    if B_pad != B:
        xT = jnp.pad(xT, ((0, 0), (0, B_pad - B)))

    cost = pl.CostEstimate(
        flops=2 * B_pad * (D * U + U * U2 + U2),
        transcendentals=0,
        bytes_accessed=4 * (B_pad * D + B_pad + U * D + U + U2 * U + U2 + U2 + 1),
    )

    out = pl.pallas_call(
        _ffn_kernel,
        out_shape=jax.ShapeDtypeStruct((1, B_pad), jnp.float32),
        grid_spec=pltpu.PrefetchScalarGridSpec(
            num_scalar_prefetch=0,
            grid=(B_pad // tb,),
            in_specs=[
                pl.BlockSpec((D, tb), lambda i: (0, i)),            # x tile (streamed)
                pl.BlockSpec((U, D), lambda i: (0, 0)),             # W1 (out, in)
                pl.BlockSpec((U, 1), lambda i: (0, 0)),             # b1 column
                pl.BlockSpec((U2, U), lambda i: (0, 0)),            # W2
                pl.BlockSpec((U2, 1), lambda i: (0, 0)),            # b2 column
                pl.BlockSpec((U2, 1), lambda i: (0, 0)),            # w3 column
                pl.BlockSpec(memory_space=pltpu.MemorySpace.SMEM),  # b3 scalar
            ],
            out_specs=pl.BlockSpec((1, tb), lambda i: (0, i)),      # lane-dense row
        ),
        compiler_params=pltpu.CompilerParams(
            dimension_semantics=("parallel",)),
        cost_estimate=cost,
    )(xT, w1, b1, w2, b2, w3, b3)

    return out[0, :B]  # .squeeze(-1) + drop batch padding (wrapper-side slice)


def init_params(key, input_size, units=32):
    """PyTorch nn.Linear-style init; weights kept in (out, in) layout."""
    u2 = units // 2
    ks = jax.random.split(key, 6)

    def lin(kw, kb, fan_in, fan_out):
        bound = 1.0 / jnp.sqrt(fan_in)
        w = jax.random.uniform(kw, (fan_out, fan_in), jnp.float32, -bound, bound)
        b = jax.random.uniform(kb, (fan_out, 1), jnp.float32, -bound, bound)
        return w, b

    w1, b1 = lin(ks[0], ks[1], input_size, units)
    w2, b2 = lin(ks[2], ks[3], units, u2)
    w3, b3 = lin(ks[4], ks[5], u2, 1)
    # Final layer: weight as a (u2, 1) column, bias as a (1,) SMEM scalar.
    return (w1, b1, w2, b2, jnp.transpose(w3), b3.reshape(1))


def _reference(x, params):
    w1, b1, w2, b2, w3, b3 = params
    h1 = jnp.maximum(x @ w1.T + b1[:, 0], 0.0)
    h2 = jnp.maximum(h1 @ w2.T + b2[:, 0], 0.0)
    return h2 @ w3[:, 0] + b3[0]


if __name__ == "__main__":
    key = jax.random.PRNGKey(0)
    kx, kp = jax.random.split(key)

    B, INPUT_SIZE, UNITS = 8, 16, 32
    x = jax.random.normal(kx, (B, INPUT_SIZE), jnp.float32)
    params = init_params(kp, INPUT_SIZE, UNITS)

    y = jax.block_until_ready(feedforward_forecast(x, params))
    y_ref = _reference(x, params)
    assert y.shape == (B,)
    assert jnp.allclose(y, y_ref, atol=1e-5, rtol=1e-5)

    # Ragged, multi-tile batch: exercises padding + the pipelined "parallel" grid.
    B2 = 300
    x2 = jax.random.normal(kx, (B2, INPUT_SIZE), jnp.float32)
    y2 = jax.block_until_ready(feedforward_forecast(x2, params, batch_tile=128))
    assert y2.shape == (B2,)
    assert jnp.allclose(y2, _reference(x2, params), atol=1e-5, rtol=1e-5)

    print("KERNEL_OK")
</pallas_src>

<mosaic_0001>
module attributes {stable_mosaic.version = 11 : i64} {
  func.func @_ffn_kernel(%arg0: i32, %arg1: memref<16x128xf32, #tpu.memory_space<vmem>>, %arg2: memref<32x16xf32, #tpu.memory_space<vmem>>, %arg3: memref<32x1xf32, #tpu.memory_space<vmem>>, %arg4: memref<16x32xf32, #tpu.memory_space<vmem>>, %arg5: memref<16x1xf32, #tpu.memory_space<vmem>>, %arg6: memref<16x1xf32, #tpu.memory_space<vmem>>, %arg7: memref<1xf32, #tpu.memory_space<smem>>, %arg8: memref<1x128xf32, #tpu.memory_space<vmem>>) attributes {dimension_semantics = [#tpu.dimension_semantics<parallel>], iteration_bounds = array<i64: 1>, scalar_prefetch = 0 : i64, scratch_operands = 0 : i64, tpu.core_type = #tpu.core_type<tc>, window_params = [{transform_indices = @transform_0, window_bounds = array<i64: 16, 128>}, {pipeline_mode = #tpu.pipeline_mode<synchronous>, transform_indices = @transform_1, window_bounds = array<i64: 32, 16>}, {pipeline_mode = #tpu.pipeline_mode<synchronous>, transform_indices = @transform_2, window_bounds = array<i64: 32, 1>}, {pipeline_mode = #tpu.pipeline_mode<synchronous>, transform_indices = @transform_3, window_bounds = array<i64: 16, 32>}, {pipeline_mode = #tpu.pipeline_mode<synchronous>, transform_indices = @transform_4, window_bounds = array<i64: 16, 1>}, {pipeline_mode = #tpu.pipeline_mode<synchronous>, transform_indices = @transform_5, window_bounds = array<i64: 16, 1>}, {transform_indices = @transform_6, window_bounds = array<i64: 1>}, {transform_indices = @transform_7, window_bounds = array<i64: 1, 128>}]} {
    %c0 = arith.constant 0 : index
    %c0_0 = arith.constant 0 : index
    %0 = vector.load %arg1[%c0, %c0_0] : memref<16x128xf32, #tpu.memory_space<vmem>>, vector<16x128xf32>
    %c0_1 = arith.constant 0 : index
    %c0_2 = arith.constant 0 : index
    %1 = vector.load %arg2[%c0_1, %c0_2] : memref<32x16xf32, #tpu.memory_space<vmem>>, vector<32x16xf32>
    %cst = arith.constant dense<0.000000e+00> : vector<32x128xf32>
    %2 = tpu.matmul %1, %0, %cst {dimension_numbers = #tpu.dot_dimension_numbers<[1], [0], [0], [1], [0, 0, 1, 1], [], []>} : vector<32x16xf32>, vector<16x128xf32>, vector<32x128xf32> -> vector<32x128xf32>
    %c0_3 = arith.constant 0 : index
    %c0_4 = arith.constant 0 : index
    %3 = vector.load %arg3[%c0_3, %c0_4] : memref<32x1xf32, #tpu.memory_space<vmem>>, vector<32x1xf32>
    %4 = vector.broadcast %3 : vector<32x1xf32> to vector<32x128xf32>
    %5 = arith.addf %2, %4 : vector<32x128xf32>
    %cst_5 = arith.constant 0.000000e+00 : f32
    %6 = vector.broadcast %cst_5 : f32 to vector<32x128xf32>
    %7 = arith.maximumf %5, %6 : vector<32x128xf32>
    %c0_6 = arith.constant 0 : index
    %c0_7 = arith.constant 0 : index
    %8 = vector.load %arg4[%c0_6, %c0_7] : memref<16x32xf32, #tpu.memory_space<vmem>>, vector<16x32xf32>
    %cst_8 = arith.constant dense<0.000000e+00> : vector<16x128xf32>
    %9 = tpu.matmul %8, %7, %cst_8 {dimension_numbers = #tpu.dot_dimension_numbers<[1], [0], [0], [1], [0, 0, 1, 1], [], []>} : vector<16x32xf32>, vector<32x128xf32>, vector<16x128xf32> -> vector<16x128xf32>
    %c0_9 = arith.constant 0 : index
    %c0_10 = arith.constant 0 : index
    %10 = vector.load %arg5[%c0_9, %c0_10] : memref<16x1xf32, #tpu.memory_space<vmem>>, vector<16x1xf32>
    %11 = vector.broadcast %10 : vector<16x1xf32> to vector<16x128xf32>
    %12 = arith.addf %9, %11 : vector<16x128xf32>
    %cst_11 = arith.constant 0.000000e+00 : f32
    %13 = vector.broadcast %cst_11 : f32 to vector<16x128xf32>
    %14 = arith.maximumf %12, %13 : vector<16x128xf32>
    %c0_12 = arith.constant 0 : index
    %c0_13 = arith.constant 0 : index
    %15 = vector.load %arg6[%c0_12, %c0_13] : memref<16x1xf32, #tpu.memory_space<vmem>>, vector<16x1xf32>
    %16 = vector.broadcast %15 : vector<16x1xf32> to vector<16x128xf32>
    %17 = arith.mulf %14, %16 : vector<16x128xf32>
    %cst_14 = arith.constant dense<0.000000e+00> : vector<128xf32>
    %18 = vector.multi_reduction <add>, %17, %cst_14 [0] : vector<16x128xf32> to vector<128xf32>
    %19 = vector.shape_cast %18 : vector<128xf32> to vector<1x128xf32>
    %c0_15 = arith.constant 0 : index
    %20 = memref.load %arg7[%c0_15] : memref<1xf32, #tpu.memory_space<smem>>
    %21 = vector.broadcast %20 : f32 to vector<1x128xf32>
    %22 = arith.addf %19, %21 : vector<1x128xf32>
    %c0_16 = arith.constant 0 : index
    %c0_17 = arith.constant 0 : index
    %23 = vector.load %arg8[%c0_16, %c0_17] : memref<1x128xf32, #tpu.memory_space<vmem>>, vector<1x128xf32>
    tpu.vector_store %arg8[%c0_16, %c0_17], %22 {strides = array<i32>} : memref<1x128xf32, #tpu.memory_space<vmem>>, vector<1x128xf32>,
    return
  }
  func.func @transform_0(%arg0: i32) -> (i32, i32) {
    %c0_i32 = arith.constant 0 : i32
    %c0_i32_0 = arith.constant 0 : i32
    return %c0_i32, %arg0 : i32, i32
  }
  func.func @transform_1(%arg0: i32) -> (i32, i32) {
    %c0_i32 = arith.constant 0 : i32
    %c0_i32_0 = arith.constant 0 : i32
    %c0_i32_1 = arith.constant 0 : i32
    return %c0_i32, %c0_i32_0 : i32, i32
  }
  func.func @transform_2(%arg0: i32) -> (i32, i32) {
    %c0_i32 = arith.constant 0 : i32
    %c0_i32_0 = arith.constant 0 : i32
    %c0_i32_1 = arith.constant 0 : i32
    return %c0_i32, %c0_i32_0 : i32, i32
  }
  func.func @transform_3(%arg0: i32) -> (i32, i32) {
    %c0_i32 = arith.constant 0 : i32
    %c0_i32_0 = arith.constant 0 : i32
    %c0_i32_1 = arith.constant 0 : i32
    return %c0_i32, %c0_i32_0 : i32, i32
  }
  func.func @transform_4(%arg0: i32) -> (i32, i32) {
    %c0_i32 = arith.constant 0 : i32
    %c0_i32_0 = arith.constant 0 : i32
    %c0_i32_1 = arith.constant 0 : i32
    return %c0_i32, %c0_i32_0 : i32, i32
  }
  func.func @transform_5(%arg0: i32) -> (i32, i32) {
    %c0_i32 = arith.constant 0 : i32
    %c0_i32_0 = arith.constant 0 : i32
    %c0_i32_1 = arith.constant 0 : i32
    return %c0_i32, %c0_i32_0 : i32, i32
  }
  func.func @transform_6(%arg0: i32) -> i32 {
    %c0_i32 = arith.constant 0 : i32
    %c0_i32_0 = arith.constant 0 : i32
    return %c0_i32 : i32
  }
  func.func @transform_7(%arg0: i32) -> (i32, i32) {
    %c0_i32 = arith.constant 0 : i32
    %c0_i32_0 = arith.constant 0 : i32
    return %c0_i32, %arg0 : i32, i32
  }
}

</mosaic_0001>

<bundles_post_ra>
// kernel: tpu_custom_call.1
= control target key start
LH: loop header
LB: loop body
LE: loop exit
PB: predicated region body
PF: predicated region fallthrough
CT: control target
= control target key end

     0   :  { %vm58_vm0 = vcmask 130048   ;;  %v362_v4 = vmov 0   ;;  %s464_s0 = inlined_call_operand.vmem [shape: f32[16,128], index: 0, kind: input, shape index: {}]   ;;  %s465_s1 = inlined_call_operand.vmem [shape: f32[32,16], index: 1, kind: input, shape index: {}]   ;;  %s466_s2 = inlined_call_operand.vmem [shape: f32[32,1], index: 2, kind: input, shape index: {}]   ;;  %s467_s3 = inlined_call_operand.vmem [shape: f32[16,32], index: 3, kind: input, shape index: {}]   ;;  %s468_s4 = inlined_call_operand.vmem [shape: f32[16,1], index: 4, kind: input, shape index: {}]   ;;  %s469_s5 = inlined_call_operand.vmem [shape: f32[16,1], index: 5, kind: input, shape index: {}]   ;;  %s470_s6 = inlined_call_operand.<no memory space> [shape: f32[1], index: 6, kind: input, shape index: {}]   ;;  %s471_s7 = inlined_call_operand.hbm [shape: f32[1,128], index: 7, kind: output, shape index: {}]  }
   0x1   :  { %v29_v0 = vld [vmem:[%s464_s0 + $0x8] sm:$0xff]  ;;  %v28_v1 = vld [vmem:[%s464_s0] sm:$0xff]  ;;  %338 = vset.pattern.permute.xlu0 %v362_v4  ;;  %v37_v5 = vld [vmem:[%s466_s2 + $0x18] sm:$0xff]  ;;  %339 = vset.pattern.permute.xlu1 %v362_v4 }
   0x2   :  { %v30_v2 = vld [vmem:[%s465_s1] sm:$0xff]  ;;  %315 = vmatprep.subr.mxu0 %v29_v0  ;;  %v31_v3 = vld [vmem:[%s465_s1 + $0x8] sm:$0xff]  ;;  %v32_v7 = vld [vmem:[%s465_s1 + $0x10] sm:$0xff]  ;;  %55 = vperm.xlu0 %338, %v37_v5  }
   0x3   :  { %319 = vmatprep.mubr.msk.f32.mxu0 %vm58_vm0, %v30_v2  ;;  %316 = vmatpush3.msra.mxu0 %v29_v0  ;;  %v35_v6 = vld [vmem:[%s466_s2 + $0x8] sm:$0xff]  ;;  %v36_v8 = vld [vmem:[%s466_s2 + $0x10] sm:$0xff] }
   0x4   :  { %317 = vmatprep.subr.mxu0 %v28_v1 }
   0x5   :  { %318 = vmatpush3.msra.mxu0 %v28_v1 }
   0x6   :  { %13 = vsyncpa [#allocation4], 0  ;;  %320 = vmatmul.mubr.msk.f32.vlgmr.msra.gmra.mxu0 %vm58_vm0, %v31_v3  ;;  %45 = vperm.xlu1 %339, %v35_v6   ;;  %v33_v9 = vld [vmem:[%s465_s1 + $0x18] sm:$0xff]  ;;  %v34_v10 = vld [vmem:[%s466_s2] sm:$0xff]  ;;  %vm174_vm1 = vcmask 261120   ;;  %v280_v51 = vstv %s470_s6  ;;  %s363_s29 = smov [#allocation3]  }
   0x7   :  { %322 = vmatprep.mubr.msk.f32.mxu0 %vm58_vm0, %v32_v7  ;;  %50 = vperm.xlu0 %338, %v36_v8   ;;  %v162_v11 = vld [vmem:[%s468_s4] sm:$0xff]  ;;  %v163_v12 = vld [vmem:[%s468_s4 + $0x8] sm:$0xff]  ;;  %s289_s30 = sshll.u32 %s363_s29, 4  ;;  %s290_s30 = int_to_ptr.vmem [resolvable:$true] %s289_s30 }
   0x8   :  { %v258_v13 = vld [vmem:[%s469_s5] sm:$0xff]  ;;  %v259_v14 = vld [vmem:[%s469_s5 + $0x8] sm:$0xff]  ;;  %s340_s8 = scalar_lea.vmem %s290_s30, 16  ;;  %s344_s9 = scalar_lea.vmem %s290_s30, 32 }
   0x9   :  { %v160_v15 = vld [vmem:[%s467_s3] sm:$0xff]  ;;  %v161_v32 = vld [vmem:[%s467_s3 + $0x8] sm:$0xff]  ;;  %p341_p0 = scmp.ne.s32.totalorder %s290_s30, %s340_s8  ;;  %p345_p1 = scmp.lt.s32.totalorder %s290_s30, %s290_s30 }
   0xa   :  { %323 = vmatmul.mubr.msk.f32.gmra.mxu0 %vm58_vm0, %v33_v9  ;;  %40 = vperm.xlu1 %339, %v34_v10   ;;  %p346_p2 = scmp.lt.s32.totalorder %s344_s9, %s340_s8 }
   0xb   :  { %166 = vperm.xlu0 %338, %v162_v11   ;;  %333 = vmatprep.mubr.msk.f32.mxu1 %vm174_vm1, %v160_v15 }
   0xc   :  { %p347_p3 = por %p346_p2, %p345_p1 }
   0xe   :  { %171 = vperm.xlu1 %339, %v163_v12   ;;  %p348_p4 = pnand %p347_p3, %p341_p0 }
   0xf   :  { %262 = vperm.xlu0 %338, %v258_v13  }
  0x12   :  { %267 = vperm.xlu1 %339, %v259_v14  }
  0x7d   :  { %v56_v16 = vpop.permute.xlu0 %55 }
  0x81   :  { %v46_v18 = vpop.permute.xlu1 %45 }
  0x82   :  { %v51_v22 = vpop.permute.xlu0 %50 }
  0x85   :  { %v41_v27 = vpop.permute.xlu1 %40 }
  0x86   :  { %v167_v33 = vpop.permute.xlu0 %166 }
  0x89   :  { %v172_v34 = vpop.permute.xlu1 %171 }
  0x8a   :  { %v263_v41 = vpop.permute.xlu0 %262 }
  0x8d   :  { %v268_v42 = vpop.permute.xlu1 %267 }
  0xc6   :  { %v321_v17 = vpop.f32.mrf.mxu0 }
  0xc7   :  { %v143_v24 = vadd.f32 %v321_v17, %v46_v18 }
  0xc8   :  { %v137_v19 = vpop.f32.mrf.mxu0 }
  0xc9   :  { %v138_v28 = vadd.f32 %v137_v19, %v41_v27  ;;  %v157_v30 = vmax.f32 %v143_v24, 0.0 }
  0xca   :  { %v324_v20 = vpop.f32.mrf.mxu0 }
  0xcb   :  { %v153_v21 = vadd.f32 %v324_v20, %v56_v16  ;;  %v156_v31 = vmax.f32 %v138_v28, 0.0 }
  0xcc   :  { %v147_v23 = vpop.f32.mrf.mxu0 }
  0xcd   :  { %v159_v25 = vmax.f32 %v153_v21, 0.0  ;;  %v148_v26 = vadd.f32 %v147_v23, %v51_v22 }
  0xcf   :  { %v158_v29 = vmax.f32 %v148_v26, 0.0  ;;  %325 = vmatprep.subr.mxu1 %v159_v25 }
  0xd0   :  { %326 = vmatpush3.msra.mxu1 %v159_v25 }
  0xd1   :  { %327 = vmatprep.subr.mxu1 %v158_v29 }
  0xd2   :  { %328 = vmatpush3.msra.mxu1 %v158_v29 }
  0xd3   :  { %329 = vmatprep.subr.mxu1 %v157_v30 }
  0xd4   :  { %330 = vmatpush3.msra.mxu1 %v157_v30 }
  0xd5   :  { %331 = vmatprep.subr.mxu1 %v156_v31 }
  0xd6   :  { %332 = vmatpush3.msra.mxu1 %v156_v31 }
  0xd7   :  { %334 = vmatmul.mubr.msk.f32.vlgmr.msra.gmra.mxu1 %vm174_vm1, %v161_v32 }
 0x197   :  { %v335_v35 = vpop.f32.mrf.mxu1 }
 0x198   :  { %v253_v36 = vadd.f32 %v335_v35, %v172_v34 }
 0x199   :  { %v247_v37 = vpop.f32.mrf.mxu1 }
 0x19a   :  { %v257_v38 = vmax.f32 %v253_v36, 0.0  ;;  %v248_v39 = vadd.f32 %v247_v37, %v167_v33 }
 0x19c   :  { %v256_v40 = vmax.f32 %v248_v39, 0.0  ;;  %v271_v43 = vmul.f32 %v268_v42, %v257_v38 }
 0x19e   :  { %v270_v44 = vmul.f32 %v263_v41, %v256_v40 }
 0x1a0   :  { %v272_v45 = vadd.f32 %v271_v43, %v270_v44 }
 0x1a2   :  { %v273_v46 = vrot.slane %v272_v45, 4 }
 0x1a4   :  { %v274_v47 = vadd.f32 %v273_v46, %v272_v45 }
 0x1a6   :  { %v275_v48 = vrot.slane %v274_v47, 2 }
 0x1a8   :  { %v276_v49 = vadd.f32 %v275_v48, %v274_v47 }
 0x1aa   :  { %v277_v50 = vrot.slane %v276_v49, 1 }
 0x1ac   :  { %v278_v52 = vadd.f32 %v277_v50, %v276_v49 }
 0x1ae   :  { %v281_v53 = vadd.f32 %v280_v51, %v278_v52 }
 0x1b0   :  { %282 = vst [vmem:[#allocation3] sm:$0x1] %v281_v53 }
 0x1b1   :  { %351 = shalt.err (!%p348_p4)
}
 0x1b2   :  { %292 = dma.vmem_to_hbm [thread:$0]  %s290_s30, 16, %s471_s7, [#allocation4]  }
 0x1b3   :  { %360 = dma.done.wait [#allocation4], 16  }
 0x1b4   :  { %361 = vsyncadd [#allocation4], 4294967280 }
 0x1b5   :  { %296 = vsyncpa [#allocation4], 1 }

</bundles_post_ra>
